<compile_context>
chip_gen: v5e
topology: v5e:2x2
jax: 0.10.0
libtpu: 0.0.40
codegen_flags: <defaults>
</compile_context>

<pallas_src>
import functools

import jax
import jax.numpy as jnp
from jax.experimental import pallas as pl
from jax.experimental.pallas import tpu as pltpu


_EPS = 1e-5
_NEG_SLOPE = 0.01                       # nn.LeakyReLU() default


def _vmem_config():
    """Per-generation sizing: (scoped vmem_limit_bytes, per-tile activation budget)."""
    cap = None
    try:
        cap = getattr(pltpu.get_tpu_info(), "vmem_capacity_bytes", None)
    except Exception:
        cap = None
    if cap is None:
        cap = 64 * 1024 * 1024                       # conservative (v7x-sized) fallback
    if cap >= 100 * 1024 * 1024:                     # v5e / v6e: 128 MiB physical VMEM
        return 100 * 1024 * 1024, 24 * 1024 * 1024
    return 48 * 1024 * 1024, 12 * 1024 * 1024        # v7x: 64 MiB physical VMEM


def _leaky(y):
    return jnp.where(y >= 0, y, _NEG_SLOPE * y)


def _bn_scale_shift(stats, gamma, beta, inv_m):
    """Fold training-mode BN into a single per-channel FMA: y * s + t."""
    mean = stats[0:1, :] * inv_m
    var = jnp.maximum(stats[1:2, :] * inv_m - mean * mean, 0.0)   # biased variance
    s = gamma * jax.lax.rsqrt(var + _EPS)
    t = beta - mean * s
    return s, t


def _write_stats(st_ref, z):
    """Per-tile (sum, sum_sq) partial stats -> (2, C) block. No concat, no read-modify-write."""
    st_ref[0:1, :] = jnp.sum(z, axis=0, keepdims=True)
    st_ref[1:2, :] = jnp.sum(z * z, axis=0, keepdims=True)


# ---------------- Pass 1: conv1 (1x1) -> z1 (bf16) + BN1 partial stats ----------------
def _p1_kernel(x_ref, w1_ref, z1_ref, st1_ref):
    z1 = jnp.dot(x_ref[...].astype(jnp.bfloat16), w1_ref[...],
                 preferred_element_type=jnp.float32)
    z1_bf = z1.astype(jnp.bfloat16)
    z1_ref[...] = z1_bf
    # Stats on the rounded values so they describe exactly what P2 will normalize.
    _write_stats(st1_ref, z1_bf.astype(jnp.float32))


# ------ Pass 2: BN1 apply + LReLU + conv2 (k=3, pad=1, fused taps) + BN2 partial stats ------
def _p2_kernel(L, inv_m, z1_ref, st1_ref, g1_ref, be1_ref, w2cat_ref, z2_ref, st2_ref):
    C = st1_ref.shape[1]
    s1, t1 = _bn_scale_shift(st1_ref[...], g1_ref[...], be1_ref[...], inv_m)
    y1 = _leaky(z1_ref[...].astype(jnp.float32) * s1 + t1)              # (TM, C) f32
    tm = y1.shape[0]

    # One MXU call against [w2_0 | w2_1 | w2_2] of shape (C, 3C); then roll/mask the
    # per-tap output slices. Roll is a row permutation, so it commutes with the matmul.
    u = jnp.dot(y1.astype(jnp.bfloat16), w2cat_ref[...],
                preferred_element_type=jnp.float32)                     # (TM, 3C)

    # Row position inside its sample (rows are sample-major, length-minor). Tiles hold
    # whole samples, so these masks handle sample edges, tile edges and roll wrap-around.
    l_idx = jax.lax.broadcasted_iota(jnp.int32, (tm, 1), 0) % L
    u_prev = jnp.where(l_idx >= 1, pltpu.roll(u[:, 0:C], shift=1, axis=0), 0.0)
    u_next = jnp.where(l_idx <= L - 2,
                       pltpu.roll(u[:, 2 * C:3 * C], shift=tm - 1, axis=0), 0.0)
    z2 = u_prev + u[:, C:2 * C] + u_next

    z2_bf = z2.astype(jnp.bfloat16)
    z2_ref[...] = z2_bf
    _write_stats(st2_ref, z2_bf.astype(jnp.float32))


# ------ Pass 3: BN2 apply + LReLU + conv3 (1x1) -> BN3 partial stats only ------
def _p3_kernel(inv_m, z2_ref, st2_ref, g2_ref, be2_ref, w3_ref, st3_ref):
    s2, t2 = _bn_scale_shift(st2_ref[...], g2_ref[...], be2_ref[...], inv_m)
    y2 = _leaky(z2_ref[...].astype(jnp.float32) * s2 + t2)
    z3 = jnp.dot(y2.astype(jnp.bfloat16), w3_ref[...], preferred_element_type=jnp.float32)
    _write_stats(st3_ref, z3)


# ------ Pass 4: recompute z3, BN3 apply, residual add, LReLU ------
def _p4_kernel(inv_m, z2_ref, x_ref, st2_ref, g2_ref, be2_ref, w3_ref,
               st3_ref, g3_ref, be3_ref, o_ref):
    s2, t2 = _bn_scale_shift(st2_ref[...], g2_ref[...], be2_ref[...], inv_m)
    y2 = _leaky(z2_ref[...].astype(jnp.float32) * s2 + t2)
    z3 = jnp.dot(y2.astype(jnp.bfloat16), w3_ref[...], preferred_element_type=jnp.float32)
    s3, t3 = _bn_scale_shift(st3_ref[...], g3_ref[...], be3_ref[...], inv_m)
    o_ref[...] = _leaky(z3 * s3 + t3 + x_ref[...].astype(jnp.float32)).astype(o_ref.dtype)


def _pick_block_n(N, L, row_bytes, tile_budget, max_tile_rows=None):
    """Number of whole samples per row tile; prefers >= 2 tiles so pipelining/megacore work."""
    cap_rows = max(tile_budget // max(row_bytes, 1), 1)
    if max_tile_rows is not None:
        cap_rows = min(cap_rows, max_tile_rows)
    candidates = []
    for bn in range(1, N + 1):
        if N % bn:
            continue
        # Non-full row blocks keep the sublane dim a multiple of 16 (bf16 packing).
        if bn < N and (bn * L) % 16:
            continue
        candidates.append(bn)
    fitting = [bn for bn in candidates if bn * L <= cap_rows]
    multi = [bn for bn in fitting if N // bn >= 2]
    if multi:
        return max(multi)
    if fitting:
        return max(fitting)
    # TODO(synk): intra-sample L tiling (with a 1-row halo for the k=3 conv) for very long L.
    return min(candidates)


def bottleneck_forward_nlc(x_nlc, params, max_tile_rows=None, out_dtype=jnp.float32):
    """x_nlc: (N, L, C_in) float32, channels-last. Returns (N, L, C_exp) out_dtype."""
    N, L, C_in = x_nlc.shape
    w1, w2, w3 = params["w1"], params["w2"], params["w3"]
    C_mid = w1.shape[1]
    C_exp = w3.shape[1]
    assert C_in == C_exp, "residual add w/o i_downsample needs in_channels == out_channels*expansion"

    M = N * L
    inv_m = 1.0 / float(M)
    x_flat = x_nlc.reshape(M, C_in)                  # free reshape: already channels-last
    # Pre-concat the three k=3 taps into one (C_mid, 3*C_mid) MXU operand (bf16).
    w2cat = jnp.concatenate([w2[0], w2[1], w2[2]], axis=1)

    vmem_limit, tile_budget = _vmem_config()
    # Conservative per-row VMEM footprint (double-buffered I/O blocks + in-kernel temps).
    row_bytes = 8 * C_in + 12 * C_exp + 40 * C_mid
    block_n = _pick_block_n(N, L, row_bytes, tile_budget, max_tile_rows)
    tile_rows = block_n * L
    num_tiles = N // block_n
    grid = (num_tiles,)

    def tile_spec(c):
        return pl.BlockSpec((tile_rows, c), lambda i: (i, 0))

    def resident(shape):
        nd = len(shape)
        return pl.BlockSpec(shape, lambda i: (0,) * nd)

    def stats_spec(c):
        # Per-tile partial-stats block: kernel sees (2, c); array is (num_tiles, 2, c).
        return pl.BlockSpec((None, 2, c), lambda i: (i, 0, 0))

    cp = pltpu.CompilerParams(dimension_semantics=("parallel",),
                              vmem_limit_bytes=vmem_limit)

    g1, be1 = params["g1"], params["be1"]
    g2, be2 = params["g2"], params["be2"]
    g3, be3 = params["g3"], params["be3"]

    out_bytes = jnp.dtype(out_dtype).itemsize
    stats_mid = num_tiles * 2 * C_mid * 4
    stats_exp = num_tiles * 2 * C_exp * 4

    ce1 = pl.CostEstimate(flops=2 * M * C_in * C_mid, transcendentals=0,
                          bytes_accessed=M * C_in * 4 + M * C_mid * 2 + w1.size * 2 + stats_mid)
    ce2 = pl.CostEstimate(flops=2 * M * C_mid * 3 * C_mid, transcendentals=0,
                          bytes_accessed=2 * M * C_mid * 2 + w2cat.size * 2 + 2 * stats_mid)
    ce3 = pl.CostEstimate(flops=2 * M * C_mid * C_exp, transcendentals=0,
                          bytes_accessed=M * C_mid * 2 + w3.size * 2 + stats_mid + stats_exp)
    ce4 = pl.CostEstimate(flops=2 * M * C_mid * C_exp, transcendentals=0,
                          bytes_accessed=M * C_mid * 2 + M * C_in * 4 + M * C_exp * out_bytes
                          + w3.size * 2 + stats_mid + stats_exp)

    # ---- P1: conv1 + BN1 partial stats ----
    z1, st1_part = pl.pallas_call(
        _p1_kernel,
        grid=grid,
        in_specs=[tile_spec(C_in), resident(w1.shape)],
        out_specs=[tile_spec(C_mid), stats_spec(C_mid)],
        out_shape=[jax.ShapeDtypeStruct((M, C_mid), jnp.bfloat16),
                   jax.ShapeDtypeStruct((num_tiles, 2, C_mid), jnp.float32)],
        compiler_params=cp,
        cost_estimate=ce1,
    )(x_flat, w1)
    st1 = jnp.sum(st1_part, axis=0)                  # tiny (T,2,C) -> (2,C) fold in XLA

    # ---- P2: BN1 apply + LReLU + conv2(k=3, fused taps) + BN2 partial stats ----
    z2, st2_part = pl.pallas_call(
        functools.partial(_p2_kernel, L, inv_m),
        grid=grid,
        in_specs=[tile_spec(C_mid), resident((2, C_mid)), resident(g1.shape),
                  resident(be1.shape), resident(w2cat.shape)],
        out_specs=[tile_spec(C_mid), stats_spec(C_mid)],
        out_shape=[jax.ShapeDtypeStruct((M, C_mid), jnp.bfloat16),
                   jax.ShapeDtypeStruct((num_tiles, 2, C_mid), jnp.float32)],
        compiler_params=cp,
        cost_estimate=ce2,
    )(z1, st1, g1, be1, w2cat)
    st2 = jnp.sum(st2_part, axis=0)

    # ---- P3: BN2 apply + LReLU + conv3 -> BN3 partial stats (no (M, C_exp) HBM round-trip) ----
    st3_part = pl.pallas_call(
        functools.partial(_p3_kernel, inv_m),
        grid=grid,
        in_specs=[tile_spec(C_mid), resident((2, C_mid)), resident(g2.shape),
                  resident(be2.shape), resident(w3.shape)],
        out_specs=stats_spec(C_exp),
        out_shape=jax.ShapeDtypeStruct((num_tiles, 2, C_exp), jnp.float32),
        compiler_params=cp,
        cost_estimate=ce3,
    )(z2, st2, g2, be2, w3)
    st3 = jnp.sum(st3_part, axis=0)

    # ---- P4: BN3 apply + residual + LReLU ----
    out_flat = pl.pallas_call(
        functools.partial(_p4_kernel, inv_m),
        grid=grid,
        in_specs=[tile_spec(C_mid), tile_spec(C_in), resident((2, C_mid)),
                  resident(g2.shape), resident(be2.shape), resident(w3.shape),
                  resident((2, C_exp)), resident(g3.shape), resident(be3.shape)],
        out_specs=tile_spec(C_exp),
        out_shape=jax.ShapeDtypeStruct((M, C_exp), out_dtype),
        compiler_params=cp,
        cost_estimate=ce4,
    )(z2, x_flat, st2, g2, be2, w3, st3, g3, be3)

    return out_flat.reshape(N, L, C_exp)


def bottleneck_forward_ncl(x_ncl, params, max_tile_rows=None, out_dtype=jnp.float32):
    """PyTorch-layout adapter: (N, C_in, L) -> (N, C_exp, L).

    NOTE: in a full channels-last model call bottleneck_forward_nlc directly and skip
    these two layout transposes (each one is an extra HBM round trip of the activation).
    """
    x_nlc = jnp.transpose(x_ncl, (0, 2, 1))
    out_nlc = bottleneck_forward_nlc(x_nlc, params, max_tile_rows, out_dtype)
    return jnp.transpose(out_nlc, (0, 2, 1))


def init_params(key, in_channels, out_channels, expansion=4):
    C_in, C_mid, C_exp = in_channels, out_channels, out_channels * expansion
    ks = jax.random.split(key, 9)
    # Conv weights, pre-transposed for channels-last matmul, stored bf16 for the MXU.
    # Conv biases are intentionally omitted: a bias right before training-mode BN is
    # exactly cancelled by the mean subtraction, so dropping it is math-equivalent.
    w1 = (0.1 * jax.random.normal(ks[0], (C_in, C_mid), jnp.float32)).astype(jnp.bfloat16)
    w2 = (0.1 * jax.random.normal(ks[1], (3, C_mid, C_mid), jnp.float32)).astype(jnp.bfloat16)
    w3 = (0.1 * jax.random.normal(ks[2], (C_mid, C_exp), jnp.float32)).astype(jnp.bfloat16)
    # BatchNorm affine params (f32).
    g1 = 1.0 + 0.1 * jax.random.normal(ks[3], (1, C_mid), jnp.float32)
    be1 = 0.1 * jax.random.normal(ks[4], (1, C_mid), jnp.float32)
    g2 = 1.0 + 0.1 * jax.random.normal(ks[5], (1, C_mid), jnp.float32)
    be2 = 0.1 * jax.random.normal(ks[6], (1, C_mid), jnp.float32)
    g3 = 1.0 + 0.1 * jax.random.normal(ks[7], (1, C_exp), jnp.float32)
    be3 = 0.1 * jax.random.normal(ks[8], (1, C_exp), jnp.float32)
    return dict(w1=w1, w2=w2, w3=w3, g1=g1, be1=be1, g2=g2, be2=be2, g3=g3, be3=be3)


def _reference_nlc(x_nlc, params):
    """Pure-JAX f32 reference matching the PyTorch module (training-mode BN, no conv bias)."""
    w1 = params["w1"].astype(jnp.float32)
    w2 = params["w2"].astype(jnp.float32)
    w3 = params["w3"].astype(jnp.float32)

    def bn(y, g, b):
        m = jnp.mean(y, axis=(0, 1), keepdims=True)
        v = jnp.mean((y - m) ** 2, axis=(0, 1), keepdims=True)
        return (y - m) * jax.lax.rsqrt(v + _EPS) * g + b

    def lrelu(y):
        return jnp.where(y >= 0, y, _NEG_SLOPE * y)

    y1 = lrelu(bn(jnp.einsum("nlc,cd->nld", x_nlc, w1), params["g1"], params["be1"]))
    y1p = jnp.pad(y1, ((0, 0), (1, 1), (0, 0)))
    z2 = (jnp.einsum("nlc,cd->nld", y1p[:, :-2], w2[0])
          + jnp.einsum("nlc,cd->nld", y1p[:, 1:-1], w2[1])
          + jnp.einsum("nlc,cd->nld", y1p[:, 2:], w2[2]))
    y2 = lrelu(bn(z2, params["g2"], params["be2"]))
    z3 = bn(jnp.einsum("nlc,cd->nld", y2, w3), params["g3"], params["be3"])
    return lrelu(z3 + x_nlc)


if __name__ == "__main__":
    # Small shapes consistent with the module: the residual add without i_downsample
    # requires in_channels == out_channels * expansion and stride == 1. out_channels=32
    # keeps the expanded channel dim at 128, i.e. lane-dense stores for the output pass.
    N, out_channels, L, expansion = 2, 32, 16, 4
    in_channels = out_channels * expansion          # 128

    key = jax.random.PRNGKey(0)
    k_x, k_p = jax.random.split(key)
    x_ncl = jax.random.normal(k_x, (N, in_channels, L), jnp.float32)   # PyTorch NCL layout
    params = init_params(k_p, in_channels, out_channels, expansion)

    # max_tile_rows forces 2 row tiles at this toy size so the cross-tile partial-stats
    # path is exercised; at real sizes leave it None (VMEM-budget driven, >=2 tiles).
    out_ncl = bottleneck_forward_ncl(x_ncl, params, max_tile_rows=L)
    out_ncl = jax.block_until_ready(out_ncl)
    assert out_ncl.shape == (N, in_channels, L)
    assert bool(jnp.all(jnp.isfinite(out_ncl)))

    ref_ncl = jnp.transpose(_reference_nlc(jnp.transpose(x_ncl, (0, 2, 1)), params), (0, 2, 1))
    # Loose tolerance: matmul operands and the inter-pass z1/z2 activations are bf16.
    max_err = float(jnp.max(jnp.abs(out_ncl - ref_ncl)))
    assert max_err < 2e-1, f"max abs error vs f32 reference too large: {max_err}"
    print("KERNEL_OK")
</pallas_src>

<mosaic_0001>
module attributes {stable_mosaic.version = 11 : i64} {
  func.func @_p1_kernel(%arg0: i32, %arg1: memref<16x128xf32, #tpu.memory_space<vmem>>, %arg2: memref<128x32xbf16, #tpu.memory_space<vmem>>, %arg3: memref<16x32xbf16, #tpu.memory_space<vmem>>, %arg4: memref<1x2x32xf32, #tpu.memory_space<vmem>>) attributes {dimension_semantics = [#tpu.dimension_semantics<parallel>], iteration_bounds = array<i64: 2>, scalar_prefetch = 0 : i64, scratch_operands = 0 : i64, tpu.core_type = #tpu.core_type<tc>, window_params = [{transform_indices = @transform_0, window_bounds = array<i64: 16, 128>}, {pipeline_mode = #tpu.pipeline_mode<synchronous>, transform_indices = @transform_1, window_bounds = array<i64: 128, 32>}, {transform_indices = @transform_2, window_bounds = array<i64: 16, 32>}, {transform_indices = @transform_3, window_bounds = array<i64: 1, 2, 32>}]} {
    %c0 = arith.constant 0 : index
    %c0_0 = arith.constant 0 : index
    %0 = vector.load %arg1[%c0, %c0_0] : memref<16x128xf32, #tpu.memory_space<vmem>>, vector<16x128xf32>
    %1 = arith.truncf %0 : vector<16x128xf32> to vector<16x128xbf16>
    %c0_1 = arith.constant 0 : index
    %c0_2 = arith.constant 0 : index
    %2 = vector.load %arg2[%c0_1, %c0_2] : memref<128x32xbf16, #tpu.memory_space<vmem>>, vector<128x32xbf16>
    %cst = arith.constant dense<0.000000e+00> : vector<16x32xf32>
    %3 = tpu.matmul %1, %2, %cst {dimension_numbers = #tpu.dot_dimension_numbers<[1], [0], [0], [1], [0, 0, 1, 1], [], []>} : vector<16x128xbf16>, vector<128x32xbf16>, vector<16x32xf32> -> vector<16x32xf32>
    %4 = arith.truncf %3 : vector<16x32xf32> to vector<16x32xbf16>
    %c0_3 = arith.constant 0 : index
    %c0_4 = arith.constant 0 : index
    %5 = vector.load %arg3[%c0_3, %c0_4] : memref<16x32xbf16, #tpu.memory_space<vmem>>, vector<16x32xbf16>
    tpu.vector_store %arg3[%c0_3, %c0_4], %4 {strides = array<i32>} : memref<16x32xbf16, #tpu.memory_space<vmem>>, vector<16x32xbf16>,
    %6 = arith.extf %4 : vector<16x32xbf16> to vector<16x32xf32>
    %cst_5 = arith.constant dense<0.000000e+00> : vector<32xf32>
    %7 = vector.multi_reduction <add>, %6, %cst_5 [0] : vector<16x32xf32> to vector<32xf32>
    %8 = vector.shape_cast %7 : vector<32xf32> to vector<1x32xf32>
    %c0_6 = arith.constant 0 : index
    %c0_7 = arith.constant 0 : index
    %c0_8 = arith.constant 0 : index
    %9 = vector.load %arg4[%c0_6, %c0_7, %c0_8] : memref<1x2x32xf32, #tpu.memory_space<vmem>>, vector<1x1x32xf32>
    %10 = vector.shape_cast %9 : vector<1x1x32xf32> to vector<1x32xf32>
    %11 = vector.shape_cast %8 : vector<1x32xf32> to vector<1x1x32xf32>
    tpu.vector_store %arg4[%c0_6, %c0_7, %c0_8], %11 {strides = array<i32>} : memref<1x2x32xf32, #tpu.memory_space<vmem>>, vector<1x1x32xf32>,
    %12 = arith.mulf %6, %6 : vector<16x32xf32>
    %cst_9 = arith.constant dense<0.000000e+00> : vector<32xf32>
    %13 = vector.multi_reduction <add>, %12, %cst_9 [0] : vector<16x32xf32> to vector<32xf32>
    %14 = vector.shape_cast %13 : vector<32xf32> to vector<1x32xf32>
    %c0_10 = arith.constant 0 : index
    %c1 = arith.constant 1 : index
    %c0_11 = arith.constant 0 : index
    %15 = vector.load %arg4[%c0_10, %c1, %c0_11] : memref<1x2x32xf32, #tpu.memory_space<vmem>>, vector<1x1x32xf32>
    %16 = vector.shape_cast %15 : vector<1x1x32xf32> to vector<1x32xf32>
    %17 = vector.shape_cast %14 : vector<1x32xf32> to vector<1x1x32xf32>
    tpu.vector_store %arg4[%c0_10, %c1, %c0_11], %17 {strides = array<i32>} : memref<1x2x32xf32, #tpu.memory_space<vmem>>, vector<1x1x32xf32>,
    return
  }
  func.func @transform_0(%arg0: i32) -> (i32, i32) {
    %c0_i32 = arith.constant 0 : i32
    %c0_i32_0 = arith.constant 0 : i32
    return %arg0, %c0_i32 : i32, i32
  }
  func.func @transform_1(%arg0: i32) -> (i32, i32) {
    %c0_i32 = arith.constant 0 : i32
    %c0_i32_0 = arith.constant 0 : i32
    %c0_i32_1 = arith.constant 0 : i32
    return %c0_i32, %c0_i32_0 : i32, i32
  }
  func.func @transform_2(%arg0: i32) -> (i32, i32) {
    %c0_i32 = arith.constant 0 : i32
    %c0_i32_0 = arith.constant 0 : i32
    return %arg0, %c0_i32 : i32, i32
  }
  func.func @transform_3(%arg0: i32) -> (i32, i32, i32) {
    %c0_i32 = arith.constant 0 : i32
    %c0_i32_0 = arith.constant 0 : i32
    %c0_i32_1 = arith.constant 0 : i32
    return %arg0, %c0_i32, %c0_i32_0 : i32, i32, i32
  }
}

</mosaic_0001>

<bundles_post_ra>
// kernel: tpu_custom_call.1
= control target key start
LH: loop header
LB: loop body
LE: loop exit
PB: predicated region body
PF: predicated region fallthrough
CT: control target
= control target key end

     0   :  { %9 = vsyncpa [#allocation3], 0  ;;  %s781_s0 = inlined_call_operand.vmem [shape: f32[32,128], index: 0, kind: input, shape index: {}]   ;;  %s782_s1 = inlined_call_operand.vmem [shape: bf16[128,32], index: 1, kind: input, shape index: {}]   ;;  %s783_s2 = inlined_call_operand.hbm [shape: bf16[32,32], index: 2, kind: output, shape index: {0}]   ;;  %s784_s3 = inlined_call_operand.hbm [shape: f32[2,2,32], index: 3, kind: output, shape index: {1}]  }
   0x1   :  { %11 = vsyncpa [#allocation3 + $0x1], 0 }
   0x2   :  { %12 = vsyncpa [#allocation5], 0 }
   0x3   :  { %14 = vsyncpa [#allocation5 + $0x1], 0  ;;  %s645_s12 = smov 0   ;;  %s647_s13 = smov 0  }
   0x4   :  { %s649_s14 = smov 0   ;;  %s651_s15 = smov 0  }
   0x5 LB: > { %s666_s16 = sadd.s32 4294967295, %s621_s15   ;;  %s425_s17 = sadd.s32 4294967294, %s621_s15   ;;  %s621_s15 = sphi %s651_s15, %s790_s15   ;;  %s617_s14 = sphi %s649_s14, %s789_s14   ;;  %s613_s13 = sphi %s647_s13, %s788_s13   ;;  %s609_s12 = sphi %s645_s12, %s787_s12  }
   0x6   : > { %s670_s18 = sadd.s32 1, %s621_s15   ;;  %s74_s19 = sadd.s32 1, %s617_s14 }
   0x7   : > { %s71_s20 = ssub.s32 %s621_s15, %s670_s18  ;;  %p84_p0 = scmp.ne.s32.totalorder %s617_s14, %s613_s13 }
   0x8   : > { %p72_p1 = scmp.eq.s32.totalorder %s71_s20, 0  ;;  %p85_p2 = scmp.eq.s32.totalorder %s666_s16, 1 }
   0x9   : > { %p90_p3 = scmp.ne.s32.totalorder %s613_s13, %s609_s12  ;;  %p91_p4 = scmp.eq.s32.totalorder %s425_s17, 1 }
   0xa   : > { %s681_s21 = scalar_select %p72_p1, %s617_s14, %s74_s19  }
   0xb   : > { %p683_p5 = por %p85_p2, %p84_p0  ;;  %p687_p6 = por %p91_p4, %p90_p3 }
   0xc   : > { %p428_p7 = scmp.ge.s32.totalorder %s621_s15, 1  ;;  %p147_p8 = scmp.lt.s32.totalorder %s621_s15, 3 }
   0xe   : > { %p148_p9 = pnand %p428_p7, %p147_p8 }
   0xf   : > { %s703_s30 = sshll.u32 (!%p148_p9), %s666_s16, 1  ;;  %s726_s28 = sand.u32 (!%p148_p9), 1, %s613_s13  }
  0x10   : > { %151 = sbr.rel (%p148_p9) target bundleno = 211 (0xd3), region = 28  ;;  %p177_p10 = scmp.lt.s32.totalorder (!%p148_p9), %s703_s30, 3 }
  0x11   : > { %s429_s29 = sshll.u32 (!%p148_p9), %s726_s28, 3  ;;  %s480_s4 = sshll.u32 (!%p148_p9), %s666_s16, 3 }
  0x12   : > { %s168_s5 = scalar_lea.vmem (!%p148_p9), [#allocation2], %s429_s29  ;;  %s296_s16 = scalar_lea.sflag (!%p148_p9), [#allocation3], %s726_s28 }
  0x13   : > { %s313_s9 = sshll.u32 (!%p148_p9), %s168_s5, 4  ;;  %s547_s24 = scalar_lea.hbm (!%p148_p9), %s783_s2, 16  ;;  %s314_s9 = int_to_ptr.vmem [resolvable:$true] %s313_s9 }
  0x15   : > { %v479_v0 = vld [vmem:[%s782_s1 + $0x38] sm:$0xff]  ;;  %v478_v1 = vld [vmem:[%s782_s1 + $0x30] sm:$0xff]  ;;  %v477_v2 = vld [vmem:[%s782_s1 + $0x28] sm:$0xff]  ;;  %s178_s8 = scalar_select %p177_p10, %s703_s30, 3  ;;  %vm266_vm0 = vcmask 257024   ;;  %vm271_vm1 = vcmask 261120  }
  0x16   : > { %250 = vmatpush.bf16.msra.mxu0 %v479_v0  ;;  %v476_v3 = vld [vmem:[%s782_s1 + $0x20] sm:$0xff]  ;;  %v475_v4 = vld [vmem:[%s782_s1 + $0x18] sm:$0xff]  ;;  %v474_v5 = vld [vmem:[%s782_s1 + $0x10] sm:$0xff] }
  0x17   : > { %s432_s11 = sshll.u32 %s178_s8, 3  ;;  %v473_v6 = vld [vmem:[%s782_s1 + $0x8] sm:$0xff]  ;;  %v472_v7 = vld [vmem:[%s782_s1] sm:$0xff]  ;;  %s312_s8 = scalar_lea.hbm %s783_s2, %s480_s4 }
  0x18   : > { %s180_s25 = scalar_lea.vmem %s781_s0, %s432_s11  ;;  %s315_s10 = sshll.u32 %s312_s8, 4  ;;  %s316_s10 = int_to_ptr.hbm [resolvable:$true] %s315_s10 }
  0x19   : > { %v183_v8 = vld [vmem:[%s180_s25] sm:$0xff]  ;;  %v184_v9 = vld [vmem:[%s180_s25 + $0x8] sm:$0xff]  ;;  %s541_s11 = sshra.s32 %s316_s10, 4  ;;  %s542_s11 = int_to_ptr.hbm [resolvable:$true] %s541_s11 }
  0x1a   : > { %251 = vmatpush.bf16.msra.mxu0 %v478_v1  ;;  %v185_v10 = vpack.c.bf16 %v184_v9, %v183_v8  ;;  %s543_s17 = scalar_lea.hbm %s542_s11, 8  ;;  %p548_p0 = scmp.lt.s32.totalorder %s542_s11, %s783_s2 }
  0x1b   : > { %p544_p11 = scmp.ne.s32.totalorder %s542_s11, %s543_s17  ;;  %p549_p1 = scmp.lt.s32.totalorder %s547_s24, %s543_s17 }
  0x1d   : > { %p545_p12 = pnand %p544_p11, %p683_p5  ;;  %p550_p2 = por %p549_p1, %p548_p0 }
  0x1e   : > { %252 = vmatpush.bf16.msra.mxu0 %v477_v2 }
  0x1f   : > { %p546_p13 = pneg %p545_p12 }
  0x21   : > { %p551_p3 = pnand %p550_p2, %p546_p13 }
  0x22   : > { %253 = vmatpush.bf16.msra.mxu0 %v476_v3 }
  0x26   : > { %254 = vmatpush.bf16.msra.mxu0 %v475_v4 }
  0x2a   : > { %255 = vmatpush.bf16.msra.mxu0 %v474_v5 }
  0x2e   : > { %256 = vmatpush.bf16.msra.mxu0 %v473_v6 }
  0x32   : > { %257 = vmatpush.bf16.msra.mxu0 %v472_v7 }
  0x35   : > { %258 = vmatmul.bf16.vlgmr.msra.gmra.mxu0 %v185_v10 }
  0xb2   : > { %v259_v11 = vpop.f32.mrf.mxu0 }
  0xb3   : > { %v264_v12 = vpack.c.bf16 %v259_v11, %v259_v11 }
  0xb5   : > { %267 = vst.msk [vmem:[%s168_s5] sm:$0xf] %vm266_vm0, %v264_v12  ;;  %v269_v13 = vunpack.c.l.bf16 %v264_v12 }
  0xb7   : > { %v283_v16 = vmul.f32 %v269_v13, %v269_v13 }
  0xba   : > { %v261_v14 = vpop.f32.mrf.mxu0 }
  0xbb   : > { %v265_v15 = vpack.c.bf16 %v261_v14, %v261_v14 }
  0xbd   : > { %268 = vst.msk [vmem:[%s168_s5 + $0x4] sm:$0xf] %vm266_vm0, %v265_v15  ;;  %v270_v17 = vunpack.c.l.bf16 %v265_v15 }
  0xbe   : > { %554 = shalt.err (!%p551_p3)
}
  0xbf   : > { %s623_s27 = smov 64   ;;  %s624_s29 = smov 4   ;;  %v272_v18 = vsel %vm271_vm1, %v269_v13, 0.0  ;;  %v273_v19 = vsel %vm271_vm1, %v270_v17, 0.0  ;;  %v284_v20 = vmul.f32 %v270_v17, %v270_v17  ;;  %v285_v22 = vsel %vm271_vm1, %v283_v16, 0.0 }
  0xc0   : > { %481 = dma.vmem_to_hbm [thread:$0]  (%p683_p5), %s314_s9, 128, %s316_s10, %s296_s16, %s623_s27, %s623_s27, %s624_s29   ;;  %v274_v21 = vadd.f32 %v273_v19, %v272_v18  ;;  %vm281_vm2 = vcmask 253952  }
  0xc1   : > { %v286_v23 = vsel %vm271_vm1, %v284_v20, 0.0  ;;  %s430_s4 = sshll.u32 %s726_s28, 1  ;;  %s328_s7 = scalar_lea.hbm %s784_s3, %s703_s30 }
  0xc2   : > { %v275_v24 = vrot.slane %v274_v21, 4  ;;  %v287_v25 = vadd.f32 %v286_v23, %v285_v22  ;;  %s175_s8 = scalar_lea.vmem [#allocation4], %s430_s4  ;;  %s332_s10 = sshll.u32 %s328_s7, 4  ;;  %s333_s10 = int_to_ptr.hbm [resolvable:$true] %s332_s10 }
  0xc3   : > { %s330_s9 = sshll.u32 %s175_s8, 4  ;;  %s301_s16 = scalar_lea.sflag [#allocation5], %s726_s28  ;;  %s331_s9 = int_to_ptr.vmem [resolvable:$true] %s330_s9 }
  0xc4   : > { %v276_v26 = vadd.f32 %v275_v24, %v274_v21  ;;  %v288_v27 = vrot.slane %v287_v25, 4  ;;  %s569_s11 = sshra.s32 %s333_s10, 4  ;;  %s575_s20 = scalar_lea.hbm %s784_s3, 4  ;;  %s570_s11 = int_to_ptr.hbm [resolvable:$true] %s569_s11 }
  0xc5   : > { %s571_s17 = scalar_lea.hbm %s570_s11, 2  ;;  %p576_p9 = scmp.lt.s32.totalorder %s570_s11, %s784_s3 }
  0xc6   : > { %v277_v28 = vrot.slane %v276_v26, 2  ;;  %v289_v29 = vadd.f32 %v288_v27, %v287_v25  ;;  %p572_p4 = scmp.ne.s32.totalorder %s570_s11, %s571_s17  ;;  %p577_p10 = scmp.lt.s32.totalorder %s575_s20, %s571_s17 }
  0xc8   : > { %v278_v30 = vadd.f32 %v277_v28, %v276_v26  ;;  %v290_v31 = vrot.slane %v289_v29, 2  ;;  %p573_p7 = pnand %p572_p4, %p683_p5  ;;  %p578_p11 = por %p577_p10, %p576_p9 }
  0xca   : > { %v279_v32 = vrot.slane %v278_v30, 1  ;;  %v291_v33 = vadd.f32 %v290_v31, %v289_v29  ;;  %p574_p8 = pneg %p573_p7 }
  0xcc   : > { %v280_v34 = vadd.f32 %v279_v32, %v278_v30  ;;  %v292_v35 = vrot.slane %v291_v33, 1  ;;  %p579_p12 = pnand %p578_p11, %p574_p8 }
  0xce   : > { %282 = vst.msk [vmem:[%s175_s8] sm:$0x1] %vm281_vm2, %v280_v34  ;;  %v293_v36 = vadd.f32 %v292_v35, %v291_v33 }
  0xd0   : > { %294 = vst.msk [vmem:[%s175_s8 + $0x1] sm:$0x1] %vm281_vm2, %v293_v36 }
  0xd1   : > { %582 = shalt.err (!%p579_p12)
}
  0xd2   : > { %482 = dma.vmem_to_hbm [thread:$0]  (%p683_p5), %s331_s9, 32, %s333_s10, %s301_s16  }
  0xd3 PF: > { %p492_p13 = scmp.ge.s32.totalorder %s621_s15, 2  ;;  %s344_s28 = sand.u32 1, %s609_s12  }
  0xd4   : > { %s345_s26 = scalar_lea.sflag [#allocation3], %s344_s28 }
  0xd5   : > { %p486_p0 = pnand %p492_p13, %p687_p6 }
  0xd7   : > { %p487_p1 = pneg %p486_p0 }
  0xd9   : > { %600 = dma.done.wait (%p487_p1), %s345_s26, 128  }
  0xda   : > { %602 = vsyncadd (%p487_p1), %s345_s26, 4294967168  ;;  %s355_s27 = scalar_lea.sflag [#allocation5], %s344_s28 }
  0xdb   : > { %604 = dma.done.wait (%p487_p1), %s355_s27, 32  }
  0xdc   : > { %606 = vsyncadd (%p487_p1), %s355_s27, 4294967264  ;;  %p17_p5 = scmp.ge.s32.totalorder %s670_s18, 4   ;;  %s787_s12 = smov %s613_s13 }
  0xdd   : > { %s788_s13 = smov %s617_s14  ;;  %s789_s14 = smov %s681_s21 }
  0xde   : > { %s790_s15 = smov %s670_s18  ;;  %19 = sbr.rel (!%p17_p5) target bundleno = 5 (0x5), region = 80 }
  0xe3   :  { %361 = vsyncpa [#allocation3], 1 }
  0xe4   :  { %363 = vsyncpa [#allocation3 + $0x1], 1 }
  0xe5   :  { %364 = vsyncpa [#allocation5], 1 }
  0xe6   :  { %366 = vsyncpa [#allocation5 + $0x1], 1 }

</bundles_post_ra>
